<compile_context>
chip_gen: v7x
topology: tpu7x:2x2x1
jax: 0.10.0
libtpu: 0.0.40
codegen_flags: <defaults>
</compile_context>

<pallas_src>
import math
import functools

import jax
import jax.numpy as jnp
import numpy as np
from jax import lax
from jax.experimental import pallas as pl
from jax.experimental.pallas import tpu as pltpu


def _mha_kernel(q_ref, h_ref, mask_ref, wq_ref, wk_ref, wv_ref, wo_ref, out_ref, *,
                n_heads):
    B, nq, D = q_ref.shape
    _, ng, _ = h_ref.shape
    H = n_heads
    Kd = wq_ref.shape[-1]
    Vd = wv_ref.shape[-1]
    E = wo_ref.shape[-1]
    HB = H * B

    f32 = jnp.float32
    bf16 = jnp.bfloat16

    # Replicate activations / weights across the fused (head, batch) leading dim so every
    # stage below is a single leading-batch dot_general (no per-head lane slices/concats).
    q = q_ref[...]                                                      # (B, nq, D) bf16
    hx = h_ref[...]                                                     # (B, ng, D) bf16
    qb = jnp.broadcast_to(q[None], (H, B, nq, D)).reshape(HB, nq, D)
    hb = jnp.broadcast_to(hx[None], (H, B, ng, D)).reshape(HB, ng, D)
    wqb = jnp.broadcast_to(wq_ref[...][:, None], (H, B, D, Kd)).reshape(HB, D, Kd)
    wkb = jnp.broadcast_to(wk_ref[...][:, None], (H, B, D, Kd)).reshape(HB, D, Kd)
    wvb = jnp.broadcast_to(wv_ref[...][:, None], (H, B, D, Vd)).reshape(HB, D, Vd)
    wob = jnp.broadcast_to(wo_ref[...][:, None], (H, B, Vd, E)).reshape(HB, Vd, E)

    dn_proj = (((2,), (1,)), ((0,), (0,)))      # bmk,bkn->bmn
    dn_qkT = (((2,), (2,)), ((0,), (0,)))       # bqd,bkd->bqk

    # Q/K/V projections (1/sqrt(key_dim) pre-folded into wq); bf16 operands, f32 accum.
    q_h = lax.dot_general(qb, wqb, dn_proj, preferred_element_type=f32).astype(bf16)
    k_h = lax.dot_general(hb, wkb, dn_proj, preferred_element_type=f32).astype(bf16)
    v_h = lax.dot_general(hb, wvb, dn_proj, preferred_element_type=f32).astype(bf16)

    # Attention scores; mask applied in-kernel (nonzero == not allowed), same "set to
    # -1e10" semantics as the reference.
    s = lax.dot_general(q_h, k_h, dn_qkT, preferred_element_type=f32)   # (HB, nq, ng)
    mb = jnp.broadcast_to(mask_ref[...][None], (H, B, nq, ng)).reshape(HB, nq, ng)
    s = jnp.where(mb != 0, jnp.float32(-1e10), s)

    # Numerically-stable softmax in f32; normalization folded in after the PV matmul.
    s_max = jnp.max(s, axis=-1, keepdims=True)
    e = jnp.exp(s - s_max)
    denom = jnp.sum(e, axis=-1, keepdims=True)

    pv = lax.dot_general(e.astype(bf16), v_h, dn_proj,
                         preferred_element_type=f32)                    # (HB, nq, Vd)
    pv = pv * pl.reciprocal(denom, approx=True)

    # Per-head output projections as one head-batched matmul, then sum over heads
    # (== concat-heads @ block-stacked W_out).
    out_hb = lax.dot_general(pv.astype(bf16), wob, dn_proj,
                             preferred_element_type=f32)                # (HB, nq, E)
    out4 = out_hb.reshape(H, B, nq, E)
    out = out4[0]
    for hd in range(1, H):
        out = out + out4[hd]

    out_ref[...] = out                                                  # (B, nq, E) f32


def prepare_mha_params(w_query, w_key, w_val, w_out):
    """One-time weight prep (hoisted out of the per-forward path): fold the 1/sqrt(key_dim)
    scale into W_query and cast everything to bf16 for the MXU."""
    key_dim = w_query.shape[-1]
    norm = 1.0 / math.sqrt(key_dim)
    return dict(
        wq=(norm * w_query).astype(jnp.bfloat16),   # (H, D, Kd)
        wk=w_key.astype(jnp.bfloat16),              # (H, D, Kd)
        wv=w_val.astype(jnp.bfloat16),              # (H, D, Vd)
        wo=w_out.astype(jnp.bfloat16),              # (H, Vd, E)
    )


def _choose_batch_block(batch, n_query, graph_size, input_dim, embed_dim, n_heads,
                        vmem_budget_bytes=8 * 1024 * 1024):
    """Largest divisor of `batch` whose per-step working set fits a conservative VMEM
    budget, preferring >= 2 grid steps so both v7x TensorCores get work.  The 8 MiB budget
    sits below the default scoped-VMEM limits on every generation (16 MiB v5e, 32 MiB
    v6e/v7x; 64 MiB physical on v7x), so no vmem_limit_bytes override is needed."""
    # Streamed blocks are double-buffered bf16; in-kernel intermediates are replicated
    # across heads and mostly f32.
    per_b = 2 * 2 * (n_query * input_dim + graph_size * input_dim + n_query * graph_size)
    per_b += 2 * 4 * n_query * embed_dim
    per_b += 4 * n_heads * (2 * n_query * graph_size + n_query * input_dim
                            + 2 * graph_size * input_dim + 2 * n_query * embed_dim)
    cap = max(1, vmem_budget_bytes // max(per_b, 1))
    divisors = [d for d in range(1, batch + 1) if batch % d == 0 and d <= cap] or [1]
    multi_step = [d for d in divisors if batch // d >= 2]
    return max(multi_step) if multi_step else max(divisors)


def multi_head_attention(params, q, h=None, mask=None, *, block_batch=None,
                         interpret=False):
    """Pallas implementation of MultiHeadAttention.forward (params from prepare_mha_params)."""
    if h is None:
        h = q
    batch, n_query, input_dim = q.shape
    _, graph_size, _ = h.shape
    wq, wk, wv, wo = params["wq"], params["wk"], params["wv"], params["wo"]
    n_heads, _, key_dim = wq.shape
    val_dim = wv.shape[-1]
    embed_dim = wo.shape[-1]

    if mask is None:
        mask = jnp.zeros((batch, n_query, graph_size), jnp.bfloat16)

    if block_batch is None:
        block_batch = _choose_batch_block(batch, n_query, graph_size, input_dim,
                                          embed_dim, n_heads)
    assert batch % block_batch == 0, "block_batch must divide batch"
    grid = (batch // block_batch,)

    # bf16 MXU operands; mask as bf16 (0/1 exactly representable, half the DMA bytes).
    q_bf = q.astype(jnp.bfloat16)
    h_bf = h.astype(jnp.bfloat16)
    m_bf = mask.astype(jnp.bfloat16)

    kernel = functools.partial(_mha_kernel, n_heads=n_heads)

    grid_spec = pltpu.PrefetchScalarGridSpec(
        num_scalar_prefetch=0,
        grid=grid,
        in_specs=[
            pl.BlockSpec((block_batch, n_query, input_dim), lambda i: (i, 0, 0)),
            pl.BlockSpec((block_batch, graph_size, input_dim), lambda i: (i, 0, 0)),
            pl.BlockSpec((block_batch, n_query, graph_size), lambda i: (i, 0, 0)),
            # Weights: constant block index -> fetched once, not once per grid step.
            pl.BlockSpec((n_heads, input_dim, key_dim), lambda i: (0, 0, 0)),
            pl.BlockSpec((n_heads, input_dim, key_dim), lambda i: (0, 0, 0)),
            pl.BlockSpec((n_heads, input_dim, val_dim), lambda i: (0, 0, 0)),
            pl.BlockSpec((n_heads, val_dim, embed_dim), lambda i: (0, 0, 0)),
        ],
        out_specs=pl.BlockSpec((block_batch, n_query, embed_dim), lambda i: (i, 0, 0)),
    )

    return pl.pallas_call(
        kernel,
        grid_spec=grid_spec,
        out_shape=jax.ShapeDtypeStruct((batch, n_query, embed_dim), jnp.float32),
        compiler_params=pltpu.CompilerParams(dimension_semantics=("parallel",)),
        interpret=interpret,
    )(q_bf, h_bf, m_bf, wq, wk, wv, wo)


def _reference(q, h, mask, w_query, w_key, w_val, w_out, key_dim):
    """Pure-JAX f32 reference reproducing the PyTorch forward semantics."""
    norm = 1.0 / math.sqrt(key_dim)
    Q = jnp.einsum("bqi,hik->hbqk", q, w_query)
    K = jnp.einsum("bgi,hik->hbgk", h, w_key)
    V = jnp.einsum("bgi,hiv->hbgv", h, w_val)
    compat = norm * jnp.einsum("hbqk,hbgk->hbqg", Q, K)
    compat = jnp.where(mask[None] != 0, -1e10, compat)
    attn = jax.nn.softmax(compat, axis=-1)
    heads = jnp.einsum("hbqg,hbgv->hbqv", attn, V)
    out = jnp.einsum("hbqv,hve->bqe", heads, w_out)
    return out


if __name__ == "__main__":
    # Module hyper-parameters (small, consistent with the PyTorch module).
    n_heads = 4
    input_dim = 32
    embed_dim = 32
    key_dim = embed_dim // n_heads     # val_dim defaults to embed_dim // n_heads
    val_dim = key_dim

    batch = 2
    n_query = 8
    graph_size = 10

    key = jax.random.PRNGKey(0)
    kq, kh, kmask, kwq, kwk, kwv, kwo = jax.random.split(key, 7)

    q = jax.random.normal(kq, (batch, n_query, input_dim), dtype=jnp.float32)
    h = jax.random.normal(kh, (batch, graph_size, input_dim), dtype=jnp.float32)
    # mask: 1.0 where attention is NOT possible; keep at least one allowed entry per row.
    mask = (jax.random.uniform(kmask, (batch, n_query, graph_size)) < 0.2
            ).astype(jnp.float32)
    mask = mask.at[:, :, 0].set(0.0)

    # Deterministic init mirroring init_parameters(): U(-stdv, stdv), stdv = 1/sqrt(last_dim)
    def init_param(k, shape):
        stdv = 1.0 / math.sqrt(shape[-1])
        return jax.random.uniform(k, shape, jnp.float32, -stdv, stdv)

    w_query = init_param(kwq, (n_heads, input_dim, key_dim))
    w_key = init_param(kwk, (n_heads, input_dim, key_dim))
    w_val = init_param(kwv, (n_heads, input_dim, val_dim))
    w_out = init_param(kwo, (n_heads, val_dim, embed_dim))

    # Weight packing hoisted out of the per-forward path (done once per module instance).
    params = prepare_mha_params(w_query, w_key, w_val, w_out)

    out = multi_head_attention(params, q, h, mask)
    out = jax.block_until_ready(out)

    ref = _reference(q, h, mask, w_query, w_key, w_val, w_out, key_dim)
    # bf16 MXU operands + approx reciprocal -> tolerance loosened vs the f32 reference.
    np.testing.assert_allclose(np.asarray(out), np.asarray(ref), rtol=3e-2, atol=2e-2)

    print("KERNEL_OK")
</pallas_src>

<mosaic_0001>
module attributes {stable_mosaic.version = 11 : i64} {
  func.func @_mha_kernel(%arg0: i32, %arg1: memref<1x8x32xbf16, #tpu.memory_space<vmem>>, %arg2: memref<1x10x32xbf16, #tpu.memory_space<vmem>>, %arg3: memref<1x8x10xbf16, #tpu.memory_space<vmem>>, %arg4: memref<4x32x8xbf16, #tpu.memory_space<vmem>>, %arg5: memref<4x32x8xbf16, #tpu.memory_space<vmem>>, %arg6: memref<4x32x8xbf16, #tpu.memory_space<vmem>>, %arg7: memref<4x8x32xbf16, #tpu.memory_space<vmem>>, %arg8: memref<1x8x32xf32, #tpu.memory_space<vmem>>) attributes {dimension_semantics = [#tpu.dimension_semantics<parallel>], iteration_bounds = array<i64: 2>, scalar_prefetch = 0 : i64, scratch_operands = 0 : i64, tpu.core_type = #tpu.core_type<tc>, window_params = [{transform_indices = @transform_0, window_bounds = array<i64: 1, 8, 32>}, {transform_indices = @transform_1, window_bounds = array<i64: 1, 10, 32>}, {transform_indices = @transform_2, window_bounds = array<i64: 1, 8, 10>}, {pipeline_mode = #tpu.pipeline_mode<synchronous>, transform_indices = @transform_3, window_bounds = array<i64: 4, 32, 8>}, {pipeline_mode = #tpu.pipeline_mode<synchronous>, transform_indices = @transform_4, window_bounds = array<i64: 4, 32, 8>}, {pipeline_mode = #tpu.pipeline_mode<synchronous>, transform_indices = @transform_5, window_bounds = array<i64: 4, 32, 8>}, {pipeline_mode = #tpu.pipeline_mode<synchronous>, transform_indices = @transform_6, window_bounds = array<i64: 4, 8, 32>}, {transform_indices = @transform_7, window_bounds = array<i64: 1, 8, 32>}]} {
    %c0 = arith.constant 0 : index
    %c0_0 = arith.constant 0 : index
    %c0_1 = arith.constant 0 : index
    %0 = vector.load %arg1[%c0, %c0_0, %c0_1] : memref<1x8x32xbf16, #tpu.memory_space<vmem>>, vector<1x8x32xbf16>
    %c0_2 = arith.constant 0 : index
    %c0_3 = arith.constant 0 : index
    %c0_4 = arith.constant 0 : index
    %1 = vector.load %arg2[%c0_2, %c0_3, %c0_4] : memref<1x10x32xbf16, #tpu.memory_space<vmem>>, vector<1x10x32xbf16>
    %2 = vector.shape_cast %0 : vector<1x8x32xbf16> to vector<1x1x8x32xbf16>
    %3 = vector.shape_cast %2 : vector<1x1x8x32xbf16> to vector<1x1x8x32xbf16>
    %4 = vector.broadcast %3 : vector<1x1x8x32xbf16> to vector<4x1x8x32xbf16>
    %5 = vector.shape_cast %4 : vector<4x1x8x32xbf16> to vector<4x8x32xbf16>
    %6 = vector.shape_cast %1 : vector<1x10x32xbf16> to vector<1x1x10x32xbf16>
    %7 = vector.shape_cast %6 : vector<1x1x10x32xbf16> to vector<1x1x10x32xbf16>
    %8 = vector.broadcast %7 : vector<1x1x10x32xbf16> to vector<4x1x10x32xbf16>
    %9 = vector.shape_cast %8 : vector<4x1x10x32xbf16> to vector<4x10x32xbf16>
    %c0_5 = arith.constant 0 : index
    %c0_6 = arith.constant 0 : index
    %c0_7 = arith.constant 0 : index
    %10 = vector.load %arg4[%c0_5, %c0_6, %c0_7] : memref<4x32x8xbf16, #tpu.memory_space<vmem>>, vector<4x32x8xbf16>
    %11 = vector.shape_cast %10 : vector<4x32x8xbf16> to vector<4x1x32x8xbf16>
    %12 = vector.shape_cast %11 : vector<4x1x32x8xbf16> to vector<4x32x8xbf16>
    %c0_8 = arith.constant 0 : index
    %c0_9 = arith.constant 0 : index
    %c0_10 = arith.constant 0 : index
    %13 = vector.load %arg5[%c0_8, %c0_9, %c0_10] : memref<4x32x8xbf16, #tpu.memory_space<vmem>>, vector<4x32x8xbf16>
    %14 = vector.shape_cast %13 : vector<4x32x8xbf16> to vector<4x1x32x8xbf16>
    %15 = vector.shape_cast %14 : vector<4x1x32x8xbf16> to vector<4x32x8xbf16>
    %c0_11 = arith.constant 0 : index
    %c0_12 = arith.constant 0 : index
    %c0_13 = arith.constant 0 : index
    %16 = vector.load %arg6[%c0_11, %c0_12, %c0_13] : memref<4x32x8xbf16, #tpu.memory_space<vmem>>, vector<4x32x8xbf16>
    %17 = vector.shape_cast %16 : vector<4x32x8xbf16> to vector<4x1x32x8xbf16>
    %18 = vector.shape_cast %17 : vector<4x1x32x8xbf16> to vector<4x32x8xbf16>
    %c0_14 = arith.constant 0 : index
    %c0_15 = arith.constant 0 : index
    %c0_16 = arith.constant 0 : index
    %19 = vector.load %arg7[%c0_14, %c0_15, %c0_16] : memref<4x8x32xbf16, #tpu.memory_space<vmem>>, vector<4x8x32xbf16>
    %20 = vector.shape_cast %19 : vector<4x8x32xbf16> to vector<4x1x8x32xbf16>
    %21 = vector.shape_cast %20 : vector<4x1x8x32xbf16> to vector<4x8x32xbf16>
    %cst = arith.constant dense<0.000000e+00> : vector<4x8x8xf32>
    %22 = tpu.matmul %5, %12, %cst {dimension_numbers = #tpu.dot_dimension_numbers<[2], [1], [1], [2], [0, 0, 0, 1, 1, 2], [0], [0]>} : vector<4x8x32xbf16>, vector<4x32x8xbf16>, vector<4x8x8xf32> -> vector<4x8x8xf32>
    %23 = arith.truncf %22 : vector<4x8x8xf32> to vector<4x8x8xbf16>
    %cst_17 = arith.constant dense<0.000000e+00> : vector<4x10x8xf32>
    %24 = tpu.matmul %9, %15, %cst_17 {dimension_numbers = #tpu.dot_dimension_numbers<[2], [1], [1], [2], [0, 0, 0, 1, 1, 2], [0], [0]>} : vector<4x10x32xbf16>, vector<4x32x8xbf16>, vector<4x10x8xf32> -> vector<4x10x8xf32>
    %25 = arith.truncf %24 : vector<4x10x8xf32> to vector<4x10x8xbf16>
    %cst_18 = arith.constant dense<0.000000e+00> : vector<4x10x8xf32>
    %26 = tpu.matmul %9, %18, %cst_18 {dimension_numbers = #tpu.dot_dimension_numbers<[2], [1], [1], [2], [0, 0, 0, 1, 1, 2], [0], [0]>} : vector<4x10x32xbf16>, vector<4x32x8xbf16>, vector<4x10x8xf32> -> vector<4x10x8xf32>
    %27 = arith.truncf %26 : vector<4x10x8xf32> to vector<4x10x8xbf16>
    %cst_19 = arith.constant dense<0.000000e+00> : vector<4x8x10xf32>
    %28 = tpu.matmul %23, %25, %cst_19 {dimension_numbers = #tpu.dot_dimension_numbers<[2], [2], [1], [1], [0, 0, 0, 1, 1, 1], [0], [0]>} : vector<4x8x8xbf16>, vector<4x10x8xbf16>, vector<4x8x10xf32> -> vector<4x8x10xf32>
    %c0_20 = arith.constant 0 : index
    %c0_21 = arith.constant 0 : index
    %c0_22 = arith.constant 0 : index
    %29 = vector.load %arg3[%c0_20, %c0_21, %c0_22] : memref<1x8x10xbf16, #tpu.memory_space<vmem>>, vector<1x8x10xbf16>
    %30 = vector.shape_cast %29 : vector<1x8x10xbf16> to vector<1x1x8x10xbf16>
    %31 = vector.shape_cast %30 : vector<1x1x8x10xbf16> to vector<1x1x8x10xbf16>
    %32 = vector.broadcast %31 : vector<1x1x8x10xbf16> to vector<4x1x8x10xbf16>
    %33 = vector.shape_cast %32 : vector<4x1x8x10xbf16> to vector<4x8x10xbf16>
    %cst_23 = arith.constant 0.000000e+00 : bf16
    %34 = vector.broadcast %cst_23 : bf16 to vector<4x8x10xbf16>
    %35 = arith.cmpf one, %33, %34 : vector<4x8x10xbf16>
    %cst_24 = arith.constant -1.000000e+10 : f32
    %36 = vector.broadcast %cst_24 : f32 to vector<4x8x10xf32>
    %37 = arith.select %35, %36, %28 : vector<4x8x10xi1>, vector<4x8x10xf32>
    %cst_25 = arith.constant dense<0xFF800000> : vector<4x8xf32>
    %38 = vector.multi_reduction <maximumf>, %37, %cst_25 [2] : vector<4x8x10xf32> to vector<4x8xf32>
    %39 = vector.shape_cast %38 : vector<4x8xf32> to vector<4x8x1xf32>
    %40 = vector.broadcast %39 : vector<4x8x1xf32> to vector<4x8x10xf32>
    %41 = arith.subf %37, %40 : vector<4x8x10xf32>
    %42 = math.exp %41 : vector<4x8x10xf32>
    %cst_26 = arith.constant dense<0.000000e+00> : vector<4x8xf32>
    %43 = vector.multi_reduction <add>, %42, %cst_26 [2] : vector<4x8x10xf32> to vector<4x8xf32>
    %44 = vector.shape_cast %43 : vector<4x8xf32> to vector<4x8x1xf32>
    %45 = arith.truncf %42 : vector<4x8x10xf32> to vector<4x8x10xbf16>
    %cst_27 = arith.constant dense<0.000000e+00> : vector<4x8x8xf32>
    %46 = tpu.matmul %45, %27, %cst_27 {dimension_numbers = #tpu.dot_dimension_numbers<[2], [1], [1], [2], [0, 0, 0, 1, 1, 2], [0], [0]>} : vector<4x8x10xbf16>, vector<4x10x8xbf16>, vector<4x8x8xf32> -> vector<4x8x8xf32>
    %47 = tpu.reciprocal %44 {approx = true} : vector<4x8x1xf32> -> vector<4x8x1xf32>
    %48 = vector.broadcast %47 : vector<4x8x1xf32> to vector<4x8x8xf32>
    %49 = arith.mulf %46, %48 : vector<4x8x8xf32>
    %50 = arith.truncf %49 : vector<4x8x8xf32> to vector<4x8x8xbf16>
    %cst_28 = arith.constant dense<0.000000e+00> : vector<4x8x32xf32>
    %51 = tpu.matmul %50, %21, %cst_28 {dimension_numbers = #tpu.dot_dimension_numbers<[2], [1], [1], [2], [0, 0, 0, 1, 1, 2], [0], [0]>} : vector<4x8x8xbf16>, vector<4x8x32xbf16>, vector<4x8x32xf32> -> vector<4x8x32xf32>
    %52 = vector.shape_cast %51 : vector<4x8x32xf32> to vector<4x1x8x32xf32>
    %53 = vector.extract_strided_slice %52 {offsets = [0, 0, 0, 0], sizes = [1, 1, 8, 32], strides = [1, 1, 1, 1]} : vector<4x1x8x32xf32> to vector<1x1x8x32xf32>
    %54 = vector.shape_cast %53 : vector<1x1x8x32xf32> to vector<1x8x32xf32>
    %55 = vector.extract_strided_slice %52 {offsets = [1, 0, 0, 0], sizes = [1, 1, 8, 32], strides = [1, 1, 1, 1]} : vector<4x1x8x32xf32> to vector<1x1x8x32xf32>
    %56 = vector.shape_cast %55 : vector<1x1x8x32xf32> to vector<1x8x32xf32>
    %57 = arith.addf %54, %56 : vector<1x8x32xf32>
    %58 = vector.extract_strided_slice %52 {offsets = [2, 0, 0, 0], sizes = [1, 1, 8, 32], strides = [1, 1, 1, 1]} : vector<4x1x8x32xf32> to vector<1x1x8x32xf32>
    %59 = vector.shape_cast %58 : vector<1x1x8x32xf32> to vector<1x8x32xf32>
    %60 = arith.addf %57, %59 : vector<1x8x32xf32>
    %61 = vector.extract_strided_slice %52 {offsets = [3, 0, 0, 0], sizes = [1, 1, 8, 32], strides = [1, 1, 1, 1]} : vector<4x1x8x32xf32> to vector<1x1x8x32xf32>
    %62 = vector.shape_cast %61 : vector<1x1x8x32xf32> to vector<1x8x32xf32>
    %63 = arith.addf %60, %62 : vector<1x8x32xf32>
    %c0_29 = arith.constant 0 : index
    %c0_30 = arith.constant 0 : index
    %c0_31 = arith.constant 0 : index
    %64 = vector.load %arg8[%c0_29, %c0_30, %c0_31] : memref<1x8x32xf32, #tpu.memory_space<vmem>>, vector<1x8x32xf32>
    tpu.vector_store %arg8[%c0_29, %c0_30, %c0_31], %63 {strides = array<i32>} : memref<1x8x32xf32, #tpu.memory_space<vmem>>, vector<1x8x32xf32>,
    return
  }
  func.func @transform_0(%arg0: i32) -> (i32, i32, i32) {
    %c0_i32 = arith.constant 0 : i32
    %c0_i32_0 = arith.constant 0 : i32
    %c0_i32_1 = arith.constant 0 : i32
    return %arg0, %c0_i32, %c0_i32_0 : i32, i32, i32
  }
  func.func @transform_1(%arg0: i32) -> (i32, i32, i32) {
    %c0_i32 = arith.constant 0 : i32
    %c0_i32_0 = arith.constant 0 : i32
    %c0_i32_1 = arith.constant 0 : i32
    return %arg0, %c0_i32, %c0_i32_0 : i32, i32, i32
  }
  func.func @transform_2(%arg0: i32) -> (i32, i32, i32) {
    %c0_i32 = arith.constant 0 : i32
    %c0_i32_0 = arith.constant 0 : i32
    %c0_i32_1 = arith.constant 0 : i32
    return %arg0, %c0_i32, %c0_i32_0 : i32, i32, i32
  }
  func.func @transform_3(%arg0: i32) -> (i32, i32, i32) {
    %c0_i32 = arith.constant 0 : i32
    %c0_i32_0 = arith.constant 0 : i32
    %c0_i32_1 = arith.constant 0 : i32
    %c0_i32_2 = arith.constant 0 : i32
    return %c0_i32, %c0_i32_0, %c0_i32_1 : i32, i32, i32
  }
  func.func @transform_4(%arg0: i32) -> (i32, i32, i32) {
    %c0_i32 = arith.constant 0 : i32
    %c0_i32_0 = arith.constant 0 : i32
    %c0_i32_1 = arith.constant 0 : i32
    %c0_i32_2 = arith.constant 0 : i32
    return %c0_i32, %c0_i32_0, %c0_i32_1 : i32, i32, i32
  }
  func.func @transform_5(%arg0: i32) -> (i32, i32, i32) {
    %c0_i32 = arith.constant 0 : i32
    %c0_i32_0 = arith.constant 0 : i32
    %c0_i32_1 = arith.constant 0 : i32
    %c0_i32_2 = arith.constant 0 : i32
    return %c0_i32, %c0_i32_0, %c0_i32_1 : i32, i32, i32
  }
  func.func @transform_6(%arg0: i32) -> (i32, i32, i32) {
    %c0_i32 = arith.constant 0 : i32
    %c0_i32_0 = arith.constant 0 : i32
    %c0_i32_1 = arith.constant 0 : i32
    %c0_i32_2 = arith.constant 0 : i32
    return %c0_i32, %c0_i32_0, %c0_i32_1 : i32, i32, i32
  }
  func.func @transform_7(%arg0: i32) -> (i32, i32, i32) {
    %c0_i32 = arith.constant 0 : i32
    %c0_i32_0 = arith.constant 0 : i32
    %c0_i32_1 = arith.constant 0 : i32
    return %arg0, %c0_i32, %c0_i32_0 : i32, i32, i32
  }
}

</mosaic_0001>

<bundles_post_ra>
// kernel: tpu_custom_call.1
= control target key start
LH: loop header
LB: loop body
LE: loop exit
PB: predicated region body
PF: predicated region fallthrough
CT: control target
= control target key end

     0   :  { %12 = vsyncpa [#allocation3], 0  ;;  %s2604_s0 = inlined_call_operand.vmem [shape: bf16[2,8,32], index: 0, kind: input, shape index: {}]   ;;  %s2605_s1 = inlined_call_operand.vmem [shape: bf16[2,10,32], index: 1, kind: input, shape index: {}]   ;;  %s2606_s2 = inlined_call_operand.vmem [shape: bf16[2,8,10], index: 2, kind: input, shape index: {}]   ;;  %s2607_s3 = inlined_call_operand.vmem [shape: bf16[4,32,8], index: 3, kind: input, shape index: {}]   ;;  %s2608_s4 = inlined_call_operand.vmem [shape: bf16[4,32,8], index: 4, kind: input, shape index: {}]   ;;  %s2609_s5 = inlined_call_operand.vmem [shape: bf16[4,32,8], index: 5, kind: input, shape index: {}]   ;;  %s2610_s6 = inlined_call_operand.vmem [shape: bf16[4,8,32], index: 6, kind: input, shape index: {}]   ;;  %s2611_s7 = inlined_call_operand.hbm [shape: f32[2,8,32], index: 7, kind: output, shape index: {}]  }
   0x1   :  { %14 = vsyncpa [#allocation3 + $0x1], 0  ;;  %s2237_s24 = smov 0   ;;  %s2239_s25 = smov 0  }
   0x2   :  { %s2241_s26 = smov 0   ;;  %s2243_s27 = smov 0  }
   0x3 LB: > { %s2258_s28 = sadd.s32 4294967295, %s2191_s27   ;;  %s1743_s29 = sadd.s32 4294967294, %s2191_s27   ;;  %s2191_s27 = sphi %s2243_s27, %s2619_s27   ;;  %s2187_s26 = sphi %s2241_s26, %s2618_s26   ;;  %s2183_s25 = sphi %s2239_s25, %s2617_s25   ;;  %s2179_s24 = sphi %s2237_s24, %s2616_s24  }
   0x4   : > { %s2262_s30 = sadd.s32 1, %s2191_s27   ;;  %s189_s8 = sadd.s32 1, %s2187_s26 }
   0x5   : > { %s186_s9 = ssub.s32 %s2191_s27, %s2262_s30  ;;  %p199_p0 = scmp.ne.s32.totalorder %s2187_s26, %s2183_s25 }
   0x6   : > { %p187_p1 = scmp.eq.s32.totalorder %s186_s9, 0  ;;  %p200_p2 = scmp.eq.s32.totalorder %s2258_s28, 1 }
   0x7   : > { %p205_p3 = scmp.ne.s32.totalorder %s2183_s25, %s2179_s24  ;;  %p206_p4 = scmp.eq.s32.totalorder %s1743_s29, 1 }
   0x8   : > { %s2273_s10 = scalar_select %p187_p1, %s2187_s26, %s189_s8  }
   0x9   : > { %p2275_p5 = por %p200_p2, %p199_p0  ;;  %p2279_p6 = por %p206_p4, %p205_p3 }
   0xa   : > { %p1746_p7 = scmp.ge.s32.totalorder %s2191_s27, 1  ;;  %p258_p8 = scmp.lt.s32.totalorder %s2191_s27, 3 }
   0xc   : > { %p259_p9 = pnand %p1746_p7, %p258_p8 }
   0xd   : > { %v2088_v0 = vld [vmem:[%s2607_s3] sm:$0xff] (!%p259_p9)   ;;  %v2193_v1 = vmov (!%p259_p9), 0.0   ;;  %v2090_v3 = vld [vmem:[%s2607_s3 + $0x8] sm:$0xff] (!%p259_p9)   ;;  %vm2194_vm0 = vmmov (!%p259_p9), 0   ;;  %p298_p10 = scmp.lt.s32.totalorder (!%p259_p9), %s2258_s28, 1  ;;  %vm381_vm1 = vcmask (!%p259_p9), 261120  }
   0xe   : > { %262 = sbr.rel (%p259_p9) target bundleno = 1122 (0x462), region = 48  ;;  %1866 = vmatprep.subr.bf16.mxu1 (!%p259_p9), %v2193_v1  ;;  %1898 = vmatprep.subr.bf16.mxu0 (!%p259_p9), %v2193_v1  ;;  %v2089_v2 = vld [vmem:[%s2608_s4] sm:$0xff] (!%p259_p9)   ;;  %v2091_v4 = vld [vmem:[%s2608_s4 + $0x8] sm:$0xff] (!%p259_p9)   ;;  %v2093_v5 = vld [vmem:[%s2607_s3 + $0x10] sm:$0xff] (!%p259_p9)   ;;  %vm1025_vm2 = vcmask (!%p259_p9), 64512   ;;  %vm1263_vm3 = vcmask (!%p259_p9), 1044480  }
   0xf   : > { %1867 = vmatpush3.bf16.msra.mxu1 (!%p259_p9), %v2088_v0  ;;  %1870 = vmatprep.mubr.msk.bf16.mxu1 (!%p259_p9), %vm2194_vm0, %v2193_v1  ;;  %v2094_v6 = vld [vmem:[%s2608_s4 + $0x20] sm:$0xff] (!%p259_p9)   ;;  %v2095_v9 = vld [vmem:[%s2607_s3 + $0x18] sm:$0xff] (!%p259_p9)   ;;  %v2096_v10 = vld [vmem:[%s2608_s4 + $0x28] sm:$0xff] (!%p259_p9)   ;;  %vm1219_vm6 = vcmask (!%p259_p9), 80896   ;;  %vm1460_vm7 = vcmask (!%p259_p9), 1043456   ;;  %s1802_s19 = sshll.u32 (!%p259_p9), %s2258_s28, 7 }
  0x10   : > { %1899 = vmatpush3.bf16.msra.mxu0 (!%p259_p9), %v2089_v2  ;;  %1868 = vmatprep.subr.bf16.mxu1 (!%p259_p9), %v2193_v1  ;;  %v2097_v11 = vld [vmem:[%s2607_s3 + $0x20] sm:$0xff] (!%p259_p9)   ;;  %v2098_v12 = vld [vmem:[%s2607_s3 + $0x28] sm:$0xff] (!%p259_p9)   ;;  %v2099_v15 = vld [vmem:[%s2607_s3 + $0x30] sm:$0xff] (!%p259_p9)  }
  0x11   : > { %1900 = vmatprep.subr.bf16.mxu0 (!%p259_p9), %v2193_v1  ;;  %1902 = vmatprep.mubr.msk.bf16.mxu0 (!%p259_p9), %vm2194_vm0, %v2193_v1  ;;  %v2105_v13 = vld [vmem:[%s2609_s5] sm:$0xff] (!%p259_p9)   ;;  %v2106_v14 = vld [vmem:[%s2609_s5 + $0x8] sm:$0xff] (!%p259_p9)   ;;  %v2100_v17 = vld [vmem:[%s2607_s3 + $0x38] sm:$0xff] (!%p259_p9)  }
  0x12   : > { %v2107_v16 = vld [vmem:[%s2609_s5 + $0x20] sm:$0xff] (!%p259_p9)   ;;  %v2108_v18 = vld [vmem:[%s2609_s5 + $0x28] sm:$0xff] (!%p259_p9)   ;;  %v2101_v19 = vld [vmem:[%s2608_s4 + $0x10] sm:$0xff] (!%p259_p9)  }
  0x13   : > { %1869 = vmatpush3.bf16.msra.mxu1 (!%p259_p9), %v2090_v3  ;;  %v2102_v20 = vld [vmem:[%s2608_s4 + $0x18] sm:$0xff] (!%p259_p9)   ;;  %v2103_v21 = vld [vmem:[%s2608_s4 + $0x30] sm:$0xff] (!%p259_p9)  }
  0x14   : > { %1901 = vmatpush3.bf16.msra.mxu0 (!%p259_p9), %v2091_v4  ;;  %1874 = vmatprep.subr.bf16.mxu1 (!%p259_p9), %v2193_v1  ;;  %v2104_v22 = vld [vmem:[%s2608_s4 + $0x38] sm:$0xff] (!%p259_p9)   ;;  %v2109_v23 = vld [vmem:[%s2609_s5 + $0x10] sm:$0xff] (!%p259_p9)  }
  0x15   : > { %s2307_s21 = scalar_select %p298_p10, %s2258_s28, 1  ;;  %1914 = vmatprep.subr.bf16.mxu0 %v2193_v1  ;;  %v2110_v24 = vld [vmem:[%s2609_s5 + $0x18] sm:$0xff]   ;;  %v2111_v25 = vld [vmem:[%s2609_s5 + $0x30] sm:$0xff]  }
  0x16   : > { %v2112_v26 = vld [vmem:[%s2609_s5 + $0x38] sm:$0xff]   ;;  %s2196_s28 = smov [#allocation2]  }
  0x17   : > { %s1748_s29 = sshll.u32 %s2307_s21, 2  ;;  %s1805_s8 = sshll.u32 %s2307_s21, 3 }
  0x18   : > { %s301_s14 = scalar_lea.vmem %s2604_s0, %s1748_s29  ;;  %s306_s17 = scalar_lea.vmem %s2605_s1, %s1805_s8 }
  0x19   : > { %v314_v7 = vld [vmem:[%s301_s14] sm:$0xf]  ;;  %s310_s23 = scalar_lea.vmem %s2606_s2, %s1748_s29  ;;  %s2561_s29 = scalar_lea.hbm %s2611_s7, %s1802_s19 }
  0x1a   : > { %1871 = vmatmul.mubr.msk.bf16.vlgmr.msra.gmra.mrb[0].mxu1 %vm381_vm1, %v314_v7  ;;  %v2328_v8 = vld [vmem:[%s306_s17] sm:$0x1f]   ;;  %s295_s17 = sand.u32 1, %s2183_s25   ;;  %s2133_s13 = sshll.u32 %s2196_s28, 4  ;;  %s2134_s13 = int_to_ptr.vmem [resolvable:$false] %s2133_s13 }
  0x1b   : > { %1875 = vmatpush3.bf16.msra.mxu1 %v2093_v5  ;;  %1878 = vmatprep.mubr.msk.bf16.mxu1 %vm2194_vm0, %v2193_v1  ;;  %s1747_s18 = sshll.u32 %s295_s17, 3  ;;  %s1647_s8 = scalar_lea.sflag [#allocation3], %s295_s17 }
  0x1c   : > { %1903 = vmatmul.mubr.msk.bf16.vlgmr.msra.gmra.mrb[0].mxu0 %vm381_vm1, %v2328_v8  ;;  %1876 = vmatprep.subr.bf16.mxu1 %v2193_v1  ;;  %s297_s20 = scalar_lea.vmem [#allocation2], %s1747_s18  ;;  %s2135_s14 = scalar_lea.vmem %s2134_s13, 256 }
  0x1d   : > { %1915 = vmatpush3.bf16.msra.mxu0 %v2094_v6  ;;  %1918 = vmatprep.mubr.msk.bf16.mxu0 %vm2194_vm0, %v2193_v1  ;;  %s1660_s22 = sshll.u32 %s297_s20, 4  ;;  %s2563_s22 = int_to_ptr.vmem [resolvable:$true] %s1660_s22 }
  0x1e   : > { %1916 = vmatprep.subr.bf16.mxu0 %v2193_v1  ;;  %s2129_s9 = scalar_lea.vmem %s2563_s22, 128  ;;  %p2136_p0 = scmp.lt.s32.totalorder %s2563_s22, %s2134_s13 }
  0x1f   : > { %1877 = vmatpush3.bf16.msra.mxu1 %v2095_v9  ;;  %p2130_p11 = scmp.ne.s32.totalorder %s2563_s22, %s2129_s9  ;;  %p2137_p1 = scmp.lt.s32.totalorder %s2135_s14, %s2129_s9 }
  0x20   : > { %1882 = vmatprep.subr.bf16.mxu1 %v2193_v1 }
  0x21   : > { %1917 = vmatpush3.bf16.msra.mxu0 %v2096_v10  ;;  %p2131_p12 = pnand %p2130_p11, %p2275_p5  ;;  %p2138_p2 = por %p2137_p1, %p2136_p0 }
  0x22   : > { %1879 = vmatmul.mubr.msk.bf16.vlgmr.msra.gmra.mrb[4].mxu1 %vm381_vm1, %v314_v7  ;;  %1930 = vmatprep.subr.bf16.mxu0 %v2193_v1 }
  0x23   : > { %1883 = vmatpush3.bf16.msra.mxu1 %v2097_v11  ;;  %1886 = vmatprep.mubr.msk.bf16.mxu1 %vm2194_vm0, %v2193_v1  ;;  %p2132_p13 = pneg %p2131_p12 }
  0x24   : > { %1919 = vmatmul.mubr.msk.bf16.vlgmr.msra.gmra.mrb[4].mxu0 %vm381_vm1, %v2328_v8  ;;  %1884 = vmatprep.subr.bf16.mxu1 %v2193_v1 }
  0x25   : > { %1931 = vmatpush3.bf16.msra.mxu0 %v2105_v13  ;;  %1934 = vmatprep.mubr.msk.bf16.mxu0 %vm2194_vm0, %v2193_v1  ;;  %p2139_p3 = pnand %p2138_p2, %p2132_p13 }
  0x26   : > { %1932 = vmatprep.subr.bf16.mxu0 %v2193_v1 }
  0x27   : > { %1885 = vmatpush3.bf16.msra.mxu1 %v2098_v12 }
  0x28   : > { %1890 = vmatprep.subr.bf16.mxu1 %v2193_v1 }
  0x29   : > { %1933 = vmatpush3.bf16.msra.mxu0 %v2106_v14 }
  0x2a   : > { %1887 = vmatmul.mubr.msk.bf16.vlgmr.msra.gmra.mrb[8].mxu1 %vm381_vm1, %v314_v7  ;;  %1946 = vmatprep.subr.bf16.mxu0 %v2193_v1 }
  0x2b   : > { %1891 = vmatpush3.bf16.msra.mxu1 %v2099_v15  ;;  %1894 = vmatprep.mubr.msk.bf16.mxu1 %vm2194_vm0, %v2193_v1 }
  0x2c   : > { %1892 = vmatprep.subr.bf16.mxu1 %v2193_v1  ;;  %1935 = vmatmul.mubr.msk.bf16.vlgmr.msra.gmra.mrb[8].mxu0 %vm381_vm1, %v2328_v8 }
  0x2d   : > { %1947 = vmatpush3.bf16.msra.mxu0 %v2107_v16  ;;  %1950 = vmatprep.mubr.msk.bf16.mxu0 %vm2194_vm0, %v2193_v1 }
  0x2e   : > { %1948 = vmatprep.subr.bf16.mxu0 %v2193_v1 }
  0x2f   : > { %1893 = vmatpush3.bf16.msra.mxu1 %v2100_v17 }
  0x30   : > { %1906 = vmatprep.subr.bf16.mxu1 %v2193_v1 }
  0x31   : > { %1949 = vmatpush3.bf16.msra.mxu0 %v2108_v18 }
  0x32   : > { %1895 = vmatmul.mubr.msk.bf16.vlgmr.msra.gmra.mrb[12].mxu1 %vm381_vm1, %v314_v7  ;;  %1962 = vmatprep.subr.bf16.mxu0 %v2193_v1 }
  0x33   : > { %1907 = vmatpush3.bf16.msra.mxu1 %v2101_v19  ;;  %1910 = vmatprep.mubr.msk.bf16.mxu1 %vm2194_vm0, %v2193_v1 }
  0x34   : > { %1908 = vmatprep.subr.bf16.mxu1 %v2193_v1  ;;  %1951 = vmatmul.mubr.msk.bf16.vlgmr.msra.gmra.mrb[12].mxu0 %vm381_vm1, %v2328_v8 }
  0x35   : > { %1964 = vmatprep.mubr.msk.bf16.mxu0 %vm2194_vm0, %v2193_v1 }
  0x37   : > { %1909 = vmatpush3.bf16.msra.mxu1 %v2102_v20 }
  0x38   : > { %1922 = vmatprep.subr.bf16.mxu1 %v2193_v1 }
  0x3a   : > { %1911 = vmatmul.mubr.msk.bf16.vlgmr.msra.gmra.mrb[16].mxu1 %vm381_vm1, %v2328_v8 }
  0x3b   : > { %1923 = vmatpush3.bf16.msra.mxu1 %v2103_v21  ;;  %1926 = vmatprep.mubr.msk.bf16.mxu1 %vm2194_vm0, %v2193_v1 }
  0x3c   : > { %1924 = vmatprep.subr.bf16.mxu1 %v2193_v1 }
  0x3f   : > { %1925 = vmatpush3.bf16.msra.mxu1 %v2104_v22 }
  0x40   : > { %1938 = vmatprep.subr.bf16.mxu1 %v2193_v1 }
  0x42   : > { %1927 = vmatmul.mubr.msk.bf16.vlgmr.msra.gmra.mrb[20].mxu1 %vm381_vm1, %v2328_v8 }
  0x43   : > { %1942 = vmatprep.mubr.msk.bf16.mxu1 %vm2194_vm0, %v2193_v1  ;;  %1939 = vmatpush3.bf16.msra.mxu1 %v2109_v23 }
  0x44   : > { %1940 = vmatprep.subr.bf16.mxu1 %v2193_v1 }
  0x47   : > { %1941 = vmatpush3.bf16.msra.mxu1 %v2110_v24 }
  0x48   : > { %1954 = vmatprep.subr.bf16.mxu1 %v2193_v1 }
  0x4a   : > { %1943 = vmatmul.mubr.msk.bf16.vlgmr.msra.gmra.mrb[24].mxu1 %vm381_vm1, %v2328_v8 }
  0x4b   : > { %1958 = vmatprep.mubr.msk.bf16.mxu1 %vm2194_vm0, %v2193_v1  ;;  %1955 = vmatpush3.bf16.msra.mxu1 %v2111_v25 }
  0x4c   : > { %1956 = vmatprep.subr.bf16.mxu1 %v2193_v1 }
  0x4f   : > { %1957 = vmatpush3.bf16.msra.mxu1 %v2112_v26 }
  0x50   : > { %1968 = vmatprep.subr.bf16.mxu1 %v2193_v1 }
  0x52   : > { %1959 = vmatmul.mubr.msk.bf16.vlgmr.msra.gmra.mrb[28].mxu1 %vm381_vm1, %v2328_v8 }
  0x53   : > { %1970 = vmatprep.mubr.msk.bf16.mxu1 %vm2194_vm0, %v2193_v1 }
  0xed   : > { %v419_v27 = vpop.f32.mrb[0].mxu1 }
  0xee   : > { %v1872_v28 = vpop.f32.mrb[1].mxu1  ;;  %v581_v44 = vpack.c.bf16 %v419_v27, %v419_v27 }
  0xef   : > { %v639_v29 = vpop.f32.mrb[0].mxu0  ;;  %v422_v30 = vpop.f32.mrb[2].mxu1 }
  0xf0   : > { %v1904_v31 = vpop.f32.mrb[1].mxu0  ;;  %v1873_v32 = vpop.f32.mrb[3].mxu1  ;;  %v1210_v30 = vld [vmem:[%s310_s23] sm:$0xf] }
  0xf1   : > { %v642_v33 = vpop.f32.mrb[2].mxu0  ;;  %vm1211_vm4 = vcmp.ne.bf16.partialorder %v1210_v30, 0  ;;  %v2195_v31 = vmov 0  }
  0xf2   : > { %v805_v34 = vpack.c.bf16 %v642_v33, %v639_v29  ;;  %v1905_v35 = vpop.f32.mrb[3].mxu0  ;;  %v1212_v32 = vsel %vm1211_vm4, 65537, %v2195_v31 }
  0xf3   : > { %v1213_v33 = vunpack.c.l.b16 %v1212_v32 }
  0xf4   : > { %v1030_v36 = vsel %vm1025_vm2, %v805_v34, 0 }
  0xf5   : > { %1963 = vmatpush3.bf16.xpose.msra.mxu0 %v1030_v36  ;;  %v471_v37 = vpop.f32.mrb[4].mxu1  ;;  %vm2488_vm5 = vcmp.ne.s32.totalorder %v1213_v33, 0 }
  0xf6   : > { %v1880_v38 = vpop.f32.mrb[5].mxu1  ;;  %1974 = vmatprep.subr.bf16.mxu0 %v2193_v1  ;;  %v582_v14 = vpack.c.bf16 %v471_v37, %v471_v37 }
  0xf7   : > { %v745_v39 = vpop.f32.mrb[4].mxu0  ;;  %v474_v40 = vpop.f32.mrb[6].mxu1 }
  0xf8   : > { %v1920_v41 = vpop.f32.mrb[5].mxu0  ;;  %v1881_v42 = vpop.f32.mrb[7].mxu1 }
  0xf9   : > { %v748_v43 = vpop.f32.mrb[6].mxu0 }
  0xfa   : > { %v807_v45 = vpack.c.bf16 %v748_v43, %v745_v39  ;;  %v1921_v46 = vpop.f32.mrb[7].mxu0 }
  0xfc   : > { %v1122_v47 = vsel %vm1025_vm2, %v807_v45, 0  ;;  %1965 = vmatmul.mubr.msk.bf16.vlgmr.msra.gmra.mrb[16].mxu0 %vm1025_vm2, %v581_v44 }
  0xfd   : > { %1975 = vmatpush3.bf16.xpose.msra.mxu0 %v1122_v47  ;;  %v523_v48 = vpop.f32.mrb[8].mxu1  ;;  %1976 = vmatprep.mubr.msk.bf16.mxu0 %vm2194_vm0, %v2193_v1 }
  0xfe   : > { %v1888_v49 = vpop.f32.mrb[9].mxu1  ;;  %1986 = vmatprep.subr.bf16.mxu0 %v2193_v1  ;;  %v583_v55 = vpack.c.bf16 %v523_v48, %v523_v48 }
  0xff   : > { %v526_v50 = vpop.f32.mrb[10].mxu1  ;;  %v855_v51 = vpop.f32.mrb[8].mxu0 }
 0x100   : > { %v1889_v52 = vpop.f32.mrb[11].mxu1  ;;  %v1936_v53 = vpop.f32.mrb[9].mxu0 }
 0x101   : > { %v858_v54 = vpop.f32.mrb[10].mxu0 }
 0x102   : > { %v1021_v56 = vpack.c.bf16 %v858_v54, %v855_v51  ;;  %v1937_v57 = vpop.f32.mrb[11].mxu0 }
 0x104   : > { %1977 = vmatmul.mubr.msk.bf16.vlgmr.msra.gmra.mrb[20].mxu0 %vm1025_vm2, %v583_v55  ;;  %v1265_v58 = vsel %vm1263_vm3, %v1021_v56, 0 }
 0x105   : > { %v575_v59 = vpop.f32.mrb[12].mxu1  ;;  %1987 = vmatpush3.bf16.msra.mxu0 %v1265_v58  ;;  %1988 = vmatprep.mubr.msk.bf16.mxu0 %vm2194_vm0, %v2193_v1 }
 0x106   : > { %v1896_v60 = vpop.f32.mrb[13].mxu1  ;;  %1998 = vmatprep.subr.bf16.mxu0 %v2193_v1  ;;  %v584_v18 = vpack.c.bf16 %v575_v59, %v575_v59 }
 0x107   : > { %v578_v61 = vpop.f32.mrb[14].mxu1  ;;  %v2459_v62 = vpop.f32.mrb[12].mxu0 }
 0x108   : > { %v1897_v63 = vpop.f32.mrb[15].mxu1  ;;  %v1952_v0 = vpop.f32.mrb[13].mxu0 }
 0x109   : > { %v2461_v2 = vpop.f32.mrb[14].mxu0 }
 0x10a   : > { %v1023_v3 = vpack.c.bf16 %v2461_v2, %v2459_v62  ;;  %v1953_v4 = vpop.f32.mrb[15].mxu0 }
 0x10d   : > { %v692_v5 = vpop.f32.mrb[16].mxu1 }
 0x10e   : > { %v1912_v6 = vpop.f32.mrb[17].mxu1 }
 0x10f   : > { %v695_v7 = vpop.f32.mrb[18].mxu1 }
 0x110   : > { %v806_v8 = vpack.c.bf16 %v695_v7, %v692_v5  ;;  %v1913_v9 = vpop.f32.mrb[19].mxu1 }
 0x112   : > { %v1076_v10 = vsel %vm1025_vm2, %v806_v8, 0  ;;  %v1357_v8 = vsel %vm1263_vm3, %v1023_v3, 0 }
 0x113   : > { %1969 = vmatpush3.bf16.xpose.msra.mxu1 %v1076_v10 }
 0x114   : > { %1980 = vmatprep.subr.bf16.mxu1 %v2193_v1 }
 0x115   : > { %v798_v11 = vpop.f32.mrb[20].mxu1 }
 0x116   : > { %v1928_v12 = vpop.f32.mrb[21].mxu1 }
 0x117   : > { %v801_v13 = vpop.f32.mrb[22].mxu1 }
 0x118   : > { %v808_v15 = vpack.c.bf16 %v801_v13, %v798_v11  ;;  %v1929_v16 = vpop.f32.mrb[23].mxu1 }
 0x11a   : > { %v1168_v17 = vsel %vm1025_vm2, %v808_v15, 0  ;;  %1971 = vmatmul.mubr.msk.bf16.vlgmr.msra.gmra.mrb[32].mxu1 %vm1025_vm2, %v582_v14 }
 0x11b   : > { %1981 = vmatpush3.bf16.xpose.msra.mxu1 %v1168_v17  ;;  %1982 = vmatprep.mubr.msk.bf16.mxu1 %vm2194_vm0, %v2193_v1 }
 0x11c   : > { %1992 = vmatprep.subr.bf16.mxu1 %v2193_v1 }
 0x11d   : > { %v908_v19 = vpop.f32.mrb[24].mxu1 }
 0x11e   : > { %v1944_v20 = vpop.f32.mrb[25].mxu1 }
 0x11f   : > { %v911_v21 = vpop.f32.mrb[26].mxu1 }
 0x120   : > { %v1022_v22 = vpack.c.bf16 %v911_v21, %v908_v19  ;;  %v1945_v23 = vpop.f32.mrb[27].mxu1 }
 0x122   : > { %1983 = vmatmul.mubr.msk.bf16.vlgmr.msra.gmra.mrb[36].mxu1 %vm1025_vm2, %v584_v18  ;;  %v1311_v24 = vsel %vm1263_vm3, %v1022_v22, 0  ;;  %v365_v22 = vld [vmem:[%s2610_s6] sm:$0xf] }
 0x123   : > { %1994 = vmatprep.mubr.msk.bf16.mxu1 %vm2194_vm0, %v2193_v1  ;;  %1993 = vmatpush3.bf16.msra.mxu1 %v1311_v24  ;;  %v1462_v23 = vsel %vm1460_vm7, %v365_v22, 0 }
 0x124   : > { %2004 = vmatprep.subr.bf16.mxu1 %v2193_v1 }
 0x125   : > { %v2477_v25 = vpop.f32.mrb[28].mxu1 }
 0x126   : > { %v1960_v26 = vpop.f32.mrb[29].mxu1 }
 0x127   : > { %v2479_v27 = vpop.f32.mrb[30].mxu1 }
 0x128   : > { %v1024_v28 = vpack.c.bf16 %v2479_v27, %v2477_v25  ;;  %v1961_v29 = vpop.f32.mrb[31].mxu1  ;;  %v366_v27 = vld [vmem:[%s2610_s6 + $0x4] sm:$0xf] }
 0x129   : > { %v1508_v33 = vsel %vm1460_vm7, %v366_v27, 0 }
 0x12a   : > { %v1403_v18 = vsel %vm1263_vm3, %v1024_v28, 0 }
 0x1cf   : > { %v1066_v35 = vpop.f32.mrb[16].mxu0 }
 0x1d0   : > { %v1215_v36 = vsel %vm2488_vm5, -1e+10, %v1066_v35  ;;  %v1966_v37 = vpop.f32.mrb[17].mxu0 }
 0x1d1   : > { %v1069_v38 = vpop.f32.mrb[18].mxu0  ;;  %v1220_v39 = vsel %vm1219_vm6, %v1215_v36, -inf }
 0x1d2   : > { %1221 = vmax.xlane.f32.xlu0 %v1220_v39  ;;  %v1967_v40 = vpop.f32.mrb[19].mxu0 }
 0x1d7   : > { %v1158_v41 = vpop.f32.mrb[20].mxu0 }
 0x1d8   : > { %v1217_v42 = vsel %vm2488_vm5, -1e+10, %v1158_v41  ;;  %v1978_v43 = vpop.f32.mrb[21].mxu0 }
 0x1d9   : > { %v1161_v44 = vpop.f32.mrb[22].mxu0  ;;  %v1226_v45 = vsel %vm1219_vm6, %v1217_v42, -inf }
 0x1da   : > { %1227 = vmax.xlane.f32.xlu1 %v1226_v45  ;;  %v1979_v46 = vpop.f32.mrb[23].mxu0 }
 0x1ed   : > { %v1112_v47 = vpop.f32.mrb[32].mxu1 }
 0x1ee   : > { %v1216_v48 = vsel %vm2488_vm5, -1e+10, %v1112_v47  ;;  %v1972_v49 = vpop.f32.mrb[33].mxu1 }
 0x1ef   : > { %v1115_v50 = vpop.f32.mrb[34].mxu1  ;;  %v1223_v51 = vsel %vm1219_vm6, %v1216_v48, -inf }
 0x1f0   : > { %1224 = vmax.xlane.f32.xlu0 %v1223_v51  ;;  %v1973_v52 = vpop.f32.mrb[35].mxu1 }
 0x1f5   : > { %v1204_v53 = vpop.f32.mrb[36].mxu1 }
 0x1f6   : > { %v1218_v54 = vsel %vm2488_vm5, -1e+10, %v1204_v53  ;;  %v1984_v55 = vpop.f32.mrb[37].mxu1 }
 0x1f7   : > { %v1207_v56 = vpop.f32.mrb[38].mxu1  ;;  %v1229_v57 = vsel %vm1219_vm6, %v1218_v54, -inf }
 0x1f8   : > { %1230 = vmax.xlane.f32.xlu1 %v1229_v57  ;;  %v1985_v58 = vpop.f32.mrb[39].mxu1  ;;  %v368_v56 = vld [vmem:[%s2610_s6 + $0xc] sm:$0xf] }
 0x1f9   : > { %v1600_v58 = vsel %vm1460_vm7, %v368_v56, 0 }
 0x25f   : > { %v1222_v59 = vpop.xlane.xlu0 %1221 }
 0x260   : > { %v1232_v60 = vsub.f32 %v1215_v36, %v1222_v59 }
 0x262   : > { %v1236_v61 = vmul.f32 1.442695, %v1232_v60 }
 0x264   : > { %2113 = vpow2.f32 %v1236_v61 }
 0x267   : > { %v1228_v63 = vpop.xlane.xlu1 %1227 }
 0x268   : > { %v1234_v0 = vsub.f32 %v1217_v42, %v1228_v63  ;;  %v367_v42 = vld [vmem:[%s2610_s6 + $0x8] sm:$0xf] }
 0x26a   : > { %v1240_v4 = vmul.f32 1.442695, %v1234_v0 }
 0x26c   : > { %2115 = vpow2.f32 %v1240_v4 }
 0x26e   : > { %v2114_v5 = vpop.eup %2113 }
 0x26f   : > { %v1244_v6 = vsel %vm1219_vm6, %v2114_v5, 0.0  ;;  %v1256_v7 = vpack.c.bf16 %v2114_v5, %v2114_v5 }
 0x270   : > { %1245 = vadd.xlane.f32.xlu0 %v1244_v6 }
 0x271   : > { %1989 = vmatmul.mubr.msk.bf16.vlgmr.msra.gmra.mrb[24].mxu0 %vm1219_vm6, %v1256_v7 }
 0x272   : > { %1999 = vmatpush3.bf16.msra.mxu0 %v1357_v8  ;;  %2000 = vmatprep.mubr.msk.bf16.mxu0 %vm2194_vm0, %v2193_v1 }
 0x273   : > { %2010 = vmatprep.subr.bf16.mxu0 %v2193_v1 }
 0x276   : > { %v2116_v9 = vpop.eup %2115 }
 0x277   : > { %v1250_v10 = vsel %vm1219_vm6, %v2116_v9, 0.0  ;;  %v1258_v11 = vpack.c.bf16 %v2116_v9, %v2116_v9 }
 0x278   : > { %1251 = vadd.xlane.f32.xlu0 %v1250_v10 }
 0x279   : > { %2001 = vmatmul.mubr.msk.bf16.vlgmr.msra.gmra.mrb[28].mxu0 %vm1219_vm6, %v1258_v11 }
 0x27a   : > { %2012 = vmatprep.mubr.msk.bf16.mxu0 %vm2194_vm0, %v2193_v1  ;;  %2011 = vmatpush3.bf16.msra.mxu0 %v1462_v23 }
 0x27b   : > { %2016 = vmatprep.subr.bf16.mxu0 %v2193_v1 }
 0x27d   : > { %v1225_v62 = vpop.xlane.xlu0 %1224 }
 0x27e   : > { %v1233_v2 = vsub.f32 %v1216_v48, %v1225_v62  ;;  %v1554_v48 = vsel %vm1460_vm7, %v367_v42, 0 }
 0x280   : > { %v1238_v3 = vmul.f32 1.442695, %v1233_v2 }
 0x282   : > { %2117 = vpow2.f32 %v1238_v3 }
 0x285   : > { %v1231_v12 = vpop.xlane.xlu1 %1230 }
 0x286   : > { %v1235_v13 = vsub.f32 %v1218_v54, %v1231_v12 }
 0x288   : > { %v1242_v14 = vmul.f32 1.442695, %v1235_v13 }
 0x28a   : > { %2119 = vpow2.f32 %v1242_v14 }
 0x28c   : > { %v2118_v15 = vpop.eup %2117 }
 0x28d   : > { %v1247_v16 = vsel %vm1219_vm6, %v2118_v15, 0.0  ;;  %v1257_v17 = vpack.c.bf16 %v2118_v15, %v2118_v15 }
 0x28e   : > { %1248 = vadd.xlane.f32.xlu1 %v1247_v16 }
 0x28f   : > { %1995 = vmatmul.mubr.msk.bf16.vlgmr.msra.gmra.mrb[40].mxu1 %vm1219_vm6, %v1257_v17 }
 0x290   : > { %2005 = vmatpush3.bf16.msra.mxu1 %v1403_v18  ;;  %2006 = vmatprep.mubr.msk.bf16.mxu1 %vm2194_vm0, %v2193_v1 }
 0x294   : > { %v2120_v19 = vpop.eup %2119 }
 0x295   : > { %v1253_v20 = vsel %vm1219_vm6, %v2120_v19, 0.0  ;;  %v1259_v21 = vpack.c.bf16 %v2120_v19, %v2120_v19 }
 0x296   : > { %1254 = vadd.xlane.f32.xlu1 %v1253_v20 }
 0x297   : > { %2007 = vmatmul.mubr.msk.bf16.vlgmr.msra.gmra.mrb[44].mxu1 %vm1219_vm6, %v1259_v21 }
 0x2fd   : > { %v1246_v24 = vpop.xlane.xlu0 %1245 }
 0x2fe   : > { %2121 = vrcp.f32 %v1246_v24 }
 0x305   : > { %v1252_v39 = vpop.xlane.xlu0 %1251 }
 0x308   : > { %v2122_v25 = vpop.eup %2121 }
 0x31b   : > { %v1249_v38 = vpop.xlane.xlu1 %1248 }
 0x31c   : > { %2123 = vrcp.f32 %v1249_v38 }
 0x31d   : > { %2125 = vrcp.f32 %v1252_v39 }
 0x323   : > { %v1255_v50 = vpop.xlane.xlu1 %1254 }
 0x324   : > { %2127 = vrcp.f32 %v1255_v50 }
 0x326   : > { %v2124_v40 = vpop.eup %2123 }
 0x327   : > { %v2126_v52 = vpop.eup %2125 }
 0x32e   : > { %v2128_v59 = vpop.eup %2127 }
 0x344   : > { %v1301_v26 = vpop.f32.mrb[24].mxu0 }
 0x345   : > { %v1449_v28 = vmul.f32 %v2122_v25, %v1301_v26  ;;  %v1990_v29 = vpop.f32.mrb[25].mxu0 }
 0x346   : > { %v1304_v30 = vpop.f32.mrb[26].mxu0 }
 0x347   : > { %v1453_v31 = vpack.c.bf16 %v1449_v28, %v1449_v28  ;;  %v1991_v32 = vpop.f32.mrb[27].mxu0 }
 0x349   : > { %2013 = vmatmul.mubr.msk.bf16.vlgmr.msra.gmra.mrb[32].mxu0 %vm1025_vm2, %v1453_v31 }
 0x34a   : > { %2017 = vmatpush3.bf16.msra.mxu0 %v1508_v33  ;;  %2018 = vmatprep.mubr.msk.bf16.mxu0 %vm2194_vm0, %v2193_v1 }
 0x34b   : > { %2022 = vmatprep.subr.bf16.mxu0 %v2193_v1 }
 0x34c   : > { %v1393_v34 = vpop.f32.mrb[28].mxu0 }
 0x34d   : > { %v2002_v35 = vpop.f32.mrb[29].mxu0  ;;  %v1451_v54 = vmul.f32 %v2126_v52, %v1393_v34 }
 0x34e   : > { %v1396_v36 = vpop.f32.mrb[30].mxu0 }
 0x34f   : > { %v2003_v37 = vpop.f32.mrb[31].mxu0  ;;  %v1455_v57 = vpack.c.bf16 %v1451_v54, %v1451_v54 }
 0x362   : > { %v1347_v41 = vpop.f32.mrb[40].mxu1 }
 0x363   : > { %v1450_v43 = vmul.f32 %v2124_v40, %v1347_v41  ;;  %v1996_v44 = vpop.f32.mrb[41].mxu1 }
 0x364   : > { %v1350_v45 = vpop.f32.mrb[42].mxu1 }
 0x365   : > { %v1454_v46 = vpack.c.bf16 %v1450_v43, %v1450_v43  ;;  %v1997_v47 = vpop.f32.mrb[43].mxu1 }
 0x367   : > { %2019 = vmatmul.mubr.msk.bf16.vlgmr.msra.gmra.mrb[32].mxu0 %vm1025_vm2, %v1454_v46 }
 0x368   : > { %2023 = vmatpush3.bf16.msra.mxu0 %v1554_v48  ;;  %2024 = vmatprep.mubr.msk.bf16.mxu0 %vm2194_vm0, %v2193_v1 }
 0x369   : > { %2028 = vmatprep.subr.bf16.mxu0 %v2193_v1 }
 0x36a   : > { %v1439_v49 = vpop.f32.mrb[44].mxu1 }
 0x36b   : > { %v2008_v51 = vpop.f32.mrb[45].mxu1  ;;  %v1452_v60 = vmul.f32 %v2128_v59, %v1439_v49 }
 0x36c   : > { %v1442_v53 = vpop.f32.mrb[46].mxu1 }
 0x36d   : > { %v2009_v55 = vpop.f32.mrb[47].mxu1  ;;  %v1456_v61 = vpack.c.bf16 %v1452_v60, %v1452_v60 }
 0x373   : > { %2025 = vmatmul.mubr.msk.bf16.vlgmr.msra.gmra.mrb[32].mxu0 %vm1025_vm2, %v1455_v57 }
 0x374   : > { %2029 = vmatpush3.bf16.msra.mxu0 %v1600_v58  ;;  %2030 = vmatprep.mubr.msk.bf16.mxu0 %vm2194_vm0, %v2193_v1 }
 0x37f   : > { %2031 = vmatmul.mubr.msk.bf16.vlgmr.msra.gmra.mrb[32].mxu0 %vm1025_vm2, %v1456_v61 }
 0x452   : > { %v1636_v1 = vpop.f32.mrb[32].mxu0 }
 0x453   : > { %1645 = vst.msk [vmem:[%s297_s20] sm:$0xff] %vm381_vm1, %v1636_v1  ;;  %v2032_v63 = vpop.f32.mrb[33].mxu0 }
 0x454   : > { %v1639_v0 = vpop.f32.mrb[34].mxu0 }
 0x455   : > { %2142 = shalt.err (!%p2139_p3)
}
 0x456   : > { %s2143_s15 = scalar_lea.hbm %s2561_s29, 128  ;;  %s2147_s18 = scalar_lea.hbm %s2611_s7, 256 }
 0x457   : > { %p2144_p4 = scmp.ne.s32.totalorder %s2561_s29, %s2143_s15  ;;  %p2148_p9 = scmp.lt.u32.totalorder %s2561_s29, %s2611_s7 }
 0x458   : > { %p2149_p10 = scmp.lt.u32.totalorder %s2147_s18, %s2143_s15  ;;  %p2151_p12 = scmp.lt.u32.totalorder %s2143_s15, %s2561_s29 }
 0x459   : > { %p2145_p7 = pnand %p2144_p4, %p2275_p5 }
 0x45a   : > { %p2150_p11 = por %p2149_p10, %p2148_p9 }
 0x45b   : > { %p2146_p8 = pneg %p2145_p7 }
 0x45c   : > { %p2152_p13 = por %p2151_p12, %p2150_p11 }
 0x45e   : > { %p2153_p0 = pnand %p2152_p13, %p2146_p8 }
 0x460   : > { %2156 = shalt.err (!%p2153_p0)
}
 0x461   : > { %2046 = dma.vmem_to_hbm [thread:$0]  (%p2275_p5), %s2563_s22, 128, %s2561_s29, %s1647_s8   ;;  %v2033_v4 = vpop.f32.mrb[35].mxu0 }
 0x462 PF: > { %p2052_p1 = scmp.ge.s32.totalorder %s2191_s27, 2  ;;  %s1672_s23 = sand.u32 1, %s2179_s24  }
 0x463   : > { %s1673_s21 = scalar_lea.sflag [#allocation3], %s1672_s23 }
 0x464   : > { %p2049_p2 = pnand %p2052_p1, %p2279_p6 }
 0x466   : > { %2174 = dma.done.wait (!%p2049_p2), %s1673_s21, 128  }
 0x467   : > { %2176 = vsyncadd (!%p2049_p2), %s1673_s21, 4294967168  ;;  %p17_p3 = scmp.ge.s32.totalorder %s2262_s30, 4   ;;  %s2616_s24 = smov %s2183_s25 }
 0x468   : > { %s2617_s25 = smov %s2187_s26  ;;  %s2618_s26 = smov %s2273_s10 }
 0x469   : > { %s2619_s27 = smov %s2262_s30  ;;  %19 = sbr.rel (!%p17_p3) target bundleno = 3 (0x3), region = 89 }
 0x470   :  { %1678 = vsyncpa [#allocation3], 1 }
 0x471   :  { %1680 = vsyncpa [#allocation3 + $0x1], 1 }

</bundles_post_ra>
